<compile_context>
chip_gen: v5e
topology: v5e:2x2
jax: 0.10.0
libtpu: 0.0.40
codegen_flags: <defaults>
</compile_context>

<pallas_src>
import jax
import jax.numpy as jnp
from jax import lax
from jax.experimental import pallas as pl
from jax.experimental.pallas import tpu as pltpu

PACK = 8  # batch rows packed per lane-dense row: (B, F) -> (B/PACK, PACK*F)


# ---------------------------------------------------------------------------
# Kernel
# ---------------------------------------------------------------------------
def _mlp_kernel(x_ref,
                w1_ref, b1_ref, w2_ref, b2_ref, w3_ref, b3_ref,
                w4_ref, b4_ref, w5_ref, b5_ref,
                o_ref):
    # x_ref: (tm8, PACK*F) -- PACK consecutive batch rows packed per sublane
    # row, so the input block is lane-dense and the first contraction is
    # PACK*F (= 128 for F=16) wide.
    h = x_ref[...].astype(jnp.float32)

    def layer(h, w_ref, b_ref, relu):
        # Packed weights are kron(I_PACK, W).T (block-diagonal), so each of the
        # PACK batch rows sharing a sublane row only ever sees its own features.
        h = jnp.dot(h, w_ref[...], preferred_element_type=jnp.float32) + b_ref[...]
        return jnp.maximum(h, 0.0) if relu else h

    h = layer(h, w1_ref, b1_ref, True)    # (tm8, PACK*32)
    h = layer(h, w2_ref, b2_ref, True)    # (tm8, PACK*16)
    h = layer(h, w3_ref, b3_ref, True)    # (tm8, PACK*8)
    h = layer(h, w4_ref, b4_ref, True)    # (tm8, PACK*4)
    h = layer(h, w5_ref, b5_ref, False)   # (tm8, PACK*1)
    o_ref[...] = h.astype(o_ref.dtype)


# ---------------------------------------------------------------------------
# Wrapper helpers
# ---------------------------------------------------------------------------
def _round_up(x, m):
    return (x + m - 1) // m * m


def _cdiv(a, b):
    return -(-a // b)


def _choose_batch_tiling(batch, cap_rows):
    """Pick (padded_batch, tile_rows).

    tile_rows is a multiple of 128 that divides padded_batch exactly, padding
    waste is bounded by ~grid_steps*128 rows (never a full tile), and there are
    >=2 grid steps whenever the padded batch allows it (both v7x TensorCores)."""
    cap = max(128, (cap_rows // 128) * 128)
    bp128 = _round_up(batch, 128)
    n_min = max(_cdiv(bp128, cap), 2 if bp128 >= 256 else 1)
    best = None
    for n in range(n_min, n_min + 8):
        tm = _round_up(_cdiv(bp128, n), 128)
        waste = n * tm - bp128
        if best is None or waste < best[2]:
            best = (n, tm, waste)
        if waste == 0:
            break
    n, tm, _ = best
    return n * tm, tm


def _pack_params(params):
    """Fold PyTorch-convention (out,in)/(out,) params into pre-transposed
    block-diagonal packed weights matching the (B,F)->(B/PACK, PACK*F) reshape:
    W_packed = kron(I_PACK, W).T  (shape (PACK*in, PACK*out)),
    b_packed = tile(b, PACK)      (shape (1, PACK*out))."""
    eye = jnp.eye(PACK, dtype=jnp.float32)
    packed = []
    for name in ("l1", "l2", "l3", "l4", "l5"):
        w, b = params[name]
        packed.append(jnp.kron(eye, w.astype(jnp.float32)).T)
        packed.append(jnp.tile(b.reshape(1, -1).astype(jnp.float32), (1, PACK)))
    return packed


# ---------------------------------------------------------------------------
# Forward pass
# ---------------------------------------------------------------------------
def nn_regression_forward(x, params, *, tile_m=16384, input_dtype=jnp.float32):
    """x: (B, F) float32. params: dict 'l1'..'l5' of (W (out,in), b (out,)).

    Returns (B, 1) float32, matching torch NN_Regression.forward.
    input_dtype=jnp.bfloat16 halves the dominant HBM read (biggest win on v5e)
    at the cost of ~1e-2-level agreement with the f32 reference."""
    B, F = x.shape
    Bp, tm = _choose_batch_tiling(B, tile_m)
    tm8 = tm // PACK
    grid = (Bp // tm,)

    if Bp != B:
        x = jnp.pad(x, ((0, Bp - B), (0, 0)))      # zero rows -> sliced off below
    if x.dtype != input_dtype:
        x = x.astype(input_dtype)
    # Free row-major reshape (bitcast): the big operand is never transposed or
    # copied in HBM beyond the small zero pad above.
    x8 = x.reshape(Bp // PACK, PACK * F)

    packed = _pack_params(params)

    dims = [F, 32, 16, 8, 4, 1]
    flops = 2 * B * sum(dims[i] * dims[i + 1] for i in range(5))
    param_bytes = 4 * sum(int(p.size) for p in packed)
    cost = pl.CostEstimate(
        flops=flops, transcendentals=0,
        bytes_accessed=int(x8.size) * x8.dtype.itemsize + 4 * Bp + param_bytes)

    # vmem_limit from the real footprint: double-buffered x/out windows,
    # VMEM-resident packed params, plus worst-case spilled layer activations.
    lane = lambda n: _round_up(n, 128)
    sub = lambda n: _round_up(n, 8)
    footprint = (2 * tm8 * lane(PACK * F) * x8.dtype.itemsize           # x window
                 + 2 * tm8 * lane(PACK) * 4                             # out window
                 + sum(tm8 * lane(PACK * d) * 4 for d in dims[1:])      # activations
                 + 2 * sum(sub(p.shape[0]) * lane(p.shape[1]) * 4 for p in packed))
    vmem_limit = int(min(max(1.25 * footprint + (4 << 20), 32 << 20), 48 << 20))

    in_specs = [pl.BlockSpec((tm8, PACK * F), lambda i: (i, 0))]   # x tile over batch
    in_specs += [pl.BlockSpec(p.shape, lambda i: (0, 0)) for p in packed]  # resident params

    out = pl.pallas_call(
        _mlp_kernel,
        out_shape=jax.ShapeDtypeStruct((Bp // PACK, PACK), jnp.float32),
        grid=grid,
        in_specs=in_specs,
        out_specs=pl.BlockSpec((tm8, PACK), lambda i: (i, 0)),
        compiler_params=pltpu.CompilerParams(
            dimension_semantics=("parallel",),
            vmem_limit_bytes=vmem_limit),
        cost_estimate=cost,
    )(x8, *packed)

    # Free reshape back to batch order, drop batch padding, restore (B, 1).
    return out.reshape(Bp, 1)[:B]


# ---------------------------------------------------------------------------
# Reference & demo
# ---------------------------------------------------------------------------
def init_params(num_features, key):
    """nn.Linear-style U(-1/sqrt(fan_in), 1/sqrt(fan_in)) init.
    Weights stored as (out_features, in_features); biases as (out_features,)."""
    dims = [num_features, 32, 16, 8, 4, 1]
    params = {}
    for idx in range(5):
        fan_in, fan_out = dims[idx], dims[idx + 1]
        key, kw, kb = jax.random.split(key, 3)
        bound = float(fan_in) ** -0.5
        w = jax.random.uniform(kw, (fan_out, fan_in), jnp.float32, -bound, bound)
        b = jax.random.uniform(kb, (fan_out,), jnp.float32, -bound, bound)
        params[f"l{idx + 1}"] = (w, b)
    return params


def reference_forward(x, params):
    hp = lax.Precision.HIGHEST
    h = x
    for name in ("l1", "l2", "l3", "l4"):
        w, b = params[name]
        h = jnp.maximum(jnp.dot(h, w.T, precision=hp) + b, 0.0)
    w, b = params["l5"]
    return jnp.dot(h, w.T, precision=hp) + b   # (B, 1)


if __name__ == "__main__":
    key = jax.random.PRNGKey(0)
    num_features = 16
    batch = 200  # deliberately not a multiple of 128 to exercise batch padding

    key, kx = jax.random.split(key)
    x = jax.random.normal(kx, (batch, num_features), dtype=jnp.float32)
    params = init_params(num_features, key)

    out = nn_regression_forward(x, params)     # default tile cap 16384 rows
    out = jax.block_until_ready(out)

    ref = reference_forward(x, params)
    assert out.shape == (batch, 1), f"bad output shape {out.shape}"
    max_err = float(jnp.max(jnp.abs(out - ref)))
    assert jnp.allclose(out, ref, atol=5e-3, rtol=5e-3), \
        f"mismatch vs reference, max abs err {max_err}"

    print("KERNEL_OK")
</pallas_src>

<mosaic_0001>
module attributes {stable_mosaic.version = 11 : i64} {
  func.func @_mlp_kernel(%arg0: i32, %arg1: memref<16x128xf32, #tpu.memory_space<vmem>>, %arg2: memref<128x256xf32, #tpu.memory_space<vmem>>, %arg3: memref<1x256xf32, #tpu.memory_space<vmem>>, %arg4: memref<256x128xf32, #tpu.memory_space<vmem>>, %arg5: memref<1x128xf32, #tpu.memory_space<vmem>>, %arg6: memref<128x64xf32, #tpu.memory_space<vmem>>, %arg7: memref<1x64xf32, #tpu.memory_space<vmem>>, %arg8: memref<64x32xf32, #tpu.memory_space<vmem>>, %arg9: memref<1x32xf32, #tpu.memory_space<vmem>>, %arg10: memref<32x8xf32, #tpu.memory_space<vmem>>, %arg11: memref<1x8xf32, #tpu.memory_space<vmem>>, %arg12: memref<16x8xf32, #tpu.memory_space<vmem>>) attributes {dimension_semantics = [#tpu.dimension_semantics<parallel>], iteration_bounds = array<i64: 2>, scalar_prefetch = 0 : i64, scratch_operands = 0 : i64, tpu.core_type = #tpu.core_type<tc>, window_params = [{transform_indices = @transform_0, window_bounds = array<i64: 16, 128>}, {pipeline_mode = #tpu.pipeline_mode<synchronous>, transform_indices = @transform_1, window_bounds = array<i64: 128, 256>}, {pipeline_mode = #tpu.pipeline_mode<synchronous>, transform_indices = @transform_2, window_bounds = array<i64: 1, 256>}, {pipeline_mode = #tpu.pipeline_mode<synchronous>, transform_indices = @transform_3, window_bounds = array<i64: 256, 128>}, {pipeline_mode = #tpu.pipeline_mode<synchronous>, transform_indices = @transform_4, window_bounds = array<i64: 1, 128>}, {pipeline_mode = #tpu.pipeline_mode<synchronous>, transform_indices = @transform_5, window_bounds = array<i64: 128, 64>}, {pipeline_mode = #tpu.pipeline_mode<synchronous>, transform_indices = @transform_6, window_bounds = array<i64: 1, 64>}, {pipeline_mode = #tpu.pipeline_mode<synchronous>, transform_indices = @transform_7, window_bounds = array<i64: 64, 32>}, {pipeline_mode = #tpu.pipeline_mode<synchronous>, transform_indices = @transform_8, window_bounds = array<i64: 1, 32>}, {pipeline_mode = #tpu.pipeline_mode<synchronous>, transform_indices = @transform_9, window_bounds = array<i64: 32, 8>}, {pipeline_mode = #tpu.pipeline_mode<synchronous>, transform_indices = @transform_10, window_bounds = array<i64: 1, 8>}, {transform_indices = @transform_11, window_bounds = array<i64: 16, 8>}]} {
    %c0 = arith.constant 0 : index
    %c0_0 = arith.constant 0 : index
    %0 = vector.load %arg1[%c0, %c0_0] : memref<16x128xf32, #tpu.memory_space<vmem>>, vector<16x128xf32>
    %c0_1 = arith.constant 0 : index
    %c0_2 = arith.constant 0 : index
    %1 = vector.load %arg2[%c0_1, %c0_2] : memref<128x256xf32, #tpu.memory_space<vmem>>, vector<128x256xf32>
    %cst = arith.constant dense<0.000000e+00> : vector<16x256xf32>
    %2 = tpu.matmul %0, %1, %cst {dimension_numbers = #tpu.dot_dimension_numbers<[1], [0], [0], [1], [0, 0, 1, 1], [], []>} : vector<16x128xf32>, vector<128x256xf32>, vector<16x256xf32> -> vector<16x256xf32>
    %c0_3 = arith.constant 0 : index
    %c0_4 = arith.constant 0 : index
    %3 = vector.load %arg3[%c0_3, %c0_4] : memref<1x256xf32, #tpu.memory_space<vmem>>, vector<1x256xf32>
    %4 = vector.broadcast %3 : vector<1x256xf32> to vector<16x256xf32>
    %5 = arith.addf %2, %4 : vector<16x256xf32>
    %cst_5 = arith.constant 0.000000e+00 : f32
    %6 = vector.broadcast %cst_5 : f32 to vector<16x256xf32>
    %7 = arith.maximumf %5, %6 : vector<16x256xf32>
    %c0_6 = arith.constant 0 : index
    %c0_7 = arith.constant 0 : index
    %8 = vector.load %arg4[%c0_6, %c0_7] : memref<256x128xf32, #tpu.memory_space<vmem>>, vector<256x128xf32>
    %cst_8 = arith.constant dense<0.000000e+00> : vector<16x128xf32>
    %9 = tpu.matmul %7, %8, %cst_8 {dimension_numbers = #tpu.dot_dimension_numbers<[1], [0], [0], [1], [0, 0, 1, 1], [], []>} : vector<16x256xf32>, vector<256x128xf32>, vector<16x128xf32> -> vector<16x128xf32>
    %c0_9 = arith.constant 0 : index
    %c0_10 = arith.constant 0 : index
    %10 = vector.load %arg5[%c0_9, %c0_10] : memref<1x128xf32, #tpu.memory_space<vmem>>, vector<1x128xf32>
    %11 = vector.broadcast %10 : vector<1x128xf32> to vector<16x128xf32>
    %12 = arith.addf %9, %11 : vector<16x128xf32>
    %cst_11 = arith.constant 0.000000e+00 : f32
    %13 = vector.broadcast %cst_11 : f32 to vector<16x128xf32>
    %14 = arith.maximumf %12, %13 : vector<16x128xf32>
    %c0_12 = arith.constant 0 : index
    %c0_13 = arith.constant 0 : index
    %15 = vector.load %arg6[%c0_12, %c0_13] : memref<128x64xf32, #tpu.memory_space<vmem>>, vector<128x64xf32>
    %cst_14 = arith.constant dense<0.000000e+00> : vector<16x64xf32>
    %16 = tpu.matmul %14, %15, %cst_14 {dimension_numbers = #tpu.dot_dimension_numbers<[1], [0], [0], [1], [0, 0, 1, 1], [], []>} : vector<16x128xf32>, vector<128x64xf32>, vector<16x64xf32> -> vector<16x64xf32>
    %c0_15 = arith.constant 0 : index
    %c0_16 = arith.constant 0 : index
    %17 = vector.load %arg7[%c0_15, %c0_16] : memref<1x64xf32, #tpu.memory_space<vmem>>, vector<1x64xf32>
    %18 = vector.broadcast %17 : vector<1x64xf32> to vector<16x64xf32>
    %19 = arith.addf %16, %18 : vector<16x64xf32>
    %cst_17 = arith.constant 0.000000e+00 : f32
    %20 = vector.broadcast %cst_17 : f32 to vector<16x64xf32>
    %21 = arith.maximumf %19, %20 : vector<16x64xf32>
    %c0_18 = arith.constant 0 : index
    %c0_19 = arith.constant 0 : index
    %22 = vector.load %arg8[%c0_18, %c0_19] : memref<64x32xf32, #tpu.memory_space<vmem>>, vector<64x32xf32>
    %cst_20 = arith.constant dense<0.000000e+00> : vector<16x32xf32>
    %23 = tpu.matmul %21, %22, %cst_20 {dimension_numbers = #tpu.dot_dimension_numbers<[1], [0], [0], [1], [0, 0, 1, 1], [], []>} : vector<16x64xf32>, vector<64x32xf32>, vector<16x32xf32> -> vector<16x32xf32>
    %c0_21 = arith.constant 0 : index
    %c0_22 = arith.constant 0 : index
    %24 = vector.load %arg9[%c0_21, %c0_22] : memref<1x32xf32, #tpu.memory_space<vmem>>, vector<1x32xf32>
    %25 = vector.broadcast %24 : vector<1x32xf32> to vector<16x32xf32>
    %26 = arith.addf %23, %25 : vector<16x32xf32>
    %cst_23 = arith.constant 0.000000e+00 : f32
    %27 = vector.broadcast %cst_23 : f32 to vector<16x32xf32>
    %28 = arith.maximumf %26, %27 : vector<16x32xf32>
    %c0_24 = arith.constant 0 : index
    %c0_25 = arith.constant 0 : index
    %29 = vector.load %arg10[%c0_24, %c0_25] : memref<32x8xf32, #tpu.memory_space<vmem>>, vector<32x8xf32>
    %cst_26 = arith.constant dense<0.000000e+00> : vector<16x8xf32>
    %30 = tpu.matmul %28, %29, %cst_26 {dimension_numbers = #tpu.dot_dimension_numbers<[1], [0], [0], [1], [0, 0, 1, 1], [], []>} : vector<16x32xf32>, vector<32x8xf32>, vector<16x8xf32> -> vector<16x8xf32>
    %c0_27 = arith.constant 0 : index
    %c0_28 = arith.constant 0 : index
    %31 = vector.load %arg11[%c0_27, %c0_28] : memref<1x8xf32, #tpu.memory_space<vmem>>, vector<1x8xf32>
    %32 = vector.broadcast %31 : vector<1x8xf32> to vector<16x8xf32>
    %33 = arith.addf %30, %32 : vector<16x8xf32>
    %c0_29 = arith.constant 0 : index
    %c0_30 = arith.constant 0 : index
    %34 = vector.load %arg12[%c0_29, %c0_30] : memref<16x8xf32, #tpu.memory_space<vmem>>, vector<16x8xf32>
    tpu.vector_store %arg12[%c0_29, %c0_30], %33 {strides = array<i32>} : memref<16x8xf32, #tpu.memory_space<vmem>>, vector<16x8xf32>,
    return
  }
  func.func @transform_0(%arg0: i32) -> (i32, i32) {
    %c0_i32 = arith.constant 0 : i32
    %c0_i32_0 = arith.constant 0 : i32
    return %arg0, %c0_i32 : i32, i32
  }
  func.func @transform_1(%arg0: i32) -> (i32, i32) {
    %c0_i32 = arith.constant 0 : i32
    %c0_i32_0 = arith.constant 0 : i32
    %c0_i32_1 = arith.constant 0 : i32
    return %c0_i32, %c0_i32_0 : i32, i32
  }
  func.func @transform_2(%arg0: i32) -> (i32, i32) {
    %c0_i32 = arith.constant 0 : i32
    %c0_i32_0 = arith.constant 0 : i32
    %c0_i32_1 = arith.constant 0 : i32
    return %c0_i32, %c0_i32_0 : i32, i32
  }
  func.func @transform_3(%arg0: i32) -> (i32, i32) {
    %c0_i32 = arith.constant 0 : i32
    %c0_i32_0 = arith.constant 0 : i32
    %c0_i32_1 = arith.constant 0 : i32
    return %c0_i32, %c0_i32_0 : i32, i32
  }
  func.func @transform_4(%arg0: i32) -> (i32, i32) {
    %c0_i32 = arith.constant 0 : i32
    %c0_i32_0 = arith.constant 0 : i32
    %c0_i32_1 = arith.constant 0 : i32
    return %c0_i32, %c0_i32_0 : i32, i32
  }
  func.func @transform_5(%arg0: i32) -> (i32, i32) {
    %c0_i32 = arith.constant 0 : i32
    %c0_i32_0 = arith.constant 0 : i32
    %c0_i32_1 = arith.constant 0 : i32
    return %c0_i32, %c0_i32_0 : i32, i32
  }
  func.func @transform_6(%arg0: i32) -> (i32, i32) {
    %c0_i32 = arith.constant 0 : i32
    %c0_i32_0 = arith.constant 0 : i32
    %c0_i32_1 = arith.constant 0 : i32
    return %c0_i32, %c0_i32_0 : i32, i32
  }
  func.func @transform_7(%arg0: i32) -> (i32, i32) {
    %c0_i32 = arith.constant 0 : i32
    %c0_i32_0 = arith.constant 0 : i32
    %c0_i32_1 = arith.constant 0 : i32
    return %c0_i32, %c0_i32_0 : i32, i32
  }
  func.func @transform_8(%arg0: i32) -> (i32, i32) {
    %c0_i32 = arith.constant 0 : i32
    %c0_i32_0 = arith.constant 0 : i32
    %c0_i32_1 = arith.constant 0 : i32
    return %c0_i32, %c0_i32_0 : i32, i32
  }
  func.func @transform_9(%arg0: i32) -> (i32, i32) {
    %c0_i32 = arith.constant 0 : i32
    %c0_i32_0 = arith.constant 0 : i32
    %c0_i32_1 = arith.constant 0 : i32
    return %c0_i32, %c0_i32_0 : i32, i32
  }
  func.func @transform_10(%arg0: i32) -> (i32, i32) {
    %c0_i32 = arith.constant 0 : i32
    %c0_i32_0 = arith.constant 0 : i32
    %c0_i32_1 = arith.constant 0 : i32
    return %c0_i32, %c0_i32_0 : i32, i32
  }
  func.func @transform_11(%arg0: i32) -> (i32, i32) {
    %c0_i32 = arith.constant 0 : i32
    %c0_i32_0 = arith.constant 0 : i32
    return %arg0, %c0_i32 : i32, i32
  }
}

</mosaic_0001>

<bundles_post_ra>
// kernel: tpu_custom_call.1
= control target key start
LH: loop header
LB: loop body
LE: loop exit
PB: predicated region body
PF: predicated region fallthrough
CT: control target
= control target key end

     0   :  { %s1378_s0 = inlined_call_operand.hbm [shape: f32[32,128], index: 0, kind: input, shape index: {}]   ;;  %s1379_s1 = inlined_call_operand.vmem [shape: f32[128,256], index: 1, kind: input, shape index: {}]   ;;  %s1380_s2 = inlined_call_operand.vmem [shape: f32[1,256], index: 2, kind: input, shape index: {}]   ;;  %s1381_s3 = inlined_call_operand.hbm [shape: f32[256,128], index: 3, kind: input, shape index: {}]   ;;  %s1382_s4 = inlined_call_operand.vmem [shape: f32[1,128], index: 4, kind: input, shape index: {}]   ;;  %s1383_s5 = inlined_call_operand.vmem [shape: f32[128,64], index: 5, kind: input, shape index: {}]   ;;  %s1384_s6 = inlined_call_operand.vmem [shape: f32[1,64], index: 6, kind: input, shape index: {}]   ;;  %s1385_s7 = inlined_call_operand.vmem [shape: f32[64,32], index: 7, kind: input, shape index: {}]   ;;  %s1386_s8 = inlined_call_operand.vmem [shape: f32[1,32], index: 8, kind: input, shape index: {}]   ;;  %s1387_s9 = inlined_call_operand.vmem [shape: f32[32,8], index: 9, kind: input, shape index: {}]   ;;  %s1388_s10 = inlined_call_operand.vmem [shape: f32[1,8], index: 10, kind: input, shape index: {}]   ;;  %s1389_s11 = inlined_call_operand.vmem [shape: f32[32,8], index: 11, kind: output, shape index: {}]  }
   0x1   :  { %1391 = sst [smem:[#allocation8_spill]] %s1381_s3 }
   0x2   :  { %1392 = sst [smem:[#allocation9_spill]] %s1386_s8 }
   0x3   :  { %1393 = sst [smem:[#allocation10_spill]] %s1388_s10 }
   0x4   :  { %1394 = sst [smem:[#allocation11_spill]] %s1389_s11 }
   0x5   :  { %16 = vsyncpa [#allocation3], 0 }
   0x6   :  { %18 = vsyncpa [#allocation3 + $0x1], 0 }
   0x7   :  { %19 = vsyncpa [#allocation5], 0  ;;  %s1064_s17 = smov 0   ;;  %s1066_s18 = smov 0  }
   0x8   :  { %s1068_s19 = smov 0   ;;  %s1070_s20 = smov 0  }
   0x9 LB: > { %s1390_s21 = sadd.s32 4294967295, %s999_s20   ;;  %p45_p0 = scmp.ne.s32.totalorder %s991_s18, %s987_s17  ;;  %s999_s20 = sphi %s1070_s20, %s1407_s20   ;;  %s995_s19 = sphi %s1068_s19, %s1406_s19   ;;  %s991_s18 = sphi %s1066_s18, %s1405_s18   ;;  %s987_s17 = sphi %s1064_s17, %s1404_s17  }
   0xa   : > { %p1086_p1 = scmp.eq.s32.totalorder %s1390_s21, 0  ;;  %p811_p2 = scmp.ge.s32.totalorder %s999_s20, 1 }
   0xb   : > { %p292_p3 = scmp.lt.s32.totalorder %s999_s20, 3  ;;  %s1397_s3 = sld [smem:[#allocation8_spill]] }
   0xc   : > { %p1094_p4 = por %p1086_p1, %p45_p0  ;;  %s1001_s28 = smov [#allocation4]  }
   0xd   : > { %p1101_p5 = pnand %p811_p2, %p292_p3  ;;  %s311_s29 = sshll.u32 %s1001_s28, 4  ;;  %s312_s29 = int_to_ptr.vmem [resolvable:$true] %s311_s29 }
   0xe   : > { %s1110_s30 = sadd.s32 1, %s999_s20   ;;  %s1002_s12 = smov 128  }
   0xf   : > { %p851_p6 = pneg %p1101_p5  ;;  %s1003_s13 = smov 8  }
  0x10   : > { %s29_s14 = ssub.s32 %s999_s20, %s1110_s30  ;;  %s32_s15 = sadd.s32 1, %s995_s19 }
  0x11   : > { %s309_s26 = sshll.u32 %s1397_s3, 4  ;;  %p852_p7 = pnand %p851_p6, %p1086_p1  ;;  %s310_s26 = int_to_ptr.hbm [resolvable:$true] %s309_s26 }
  0x12   : > { %p30_p8 = scmp.eq.s32.totalorder %s29_s14, 0  ;;  %p39_p9 = scmp.ne.s32.totalorder %s995_s19, %s991_s18 }
  0x13   : > { %854 = dma.hbm_to_vmem [thread:$0]  (!%p852_p7), %s310_s26, 4096, %s312_s29, [#allocation5], %s1002_s12, %s1002_s12, %s1003_s13  }
  0x14   : > { %p40_p10 = scmp.eq.s32.totalorder %s999_s20, 0  ;;  %p860_p11 = scmp.lt.s32.totalorder %s999_s20, 2 }
  0x15   : > { %s1123_s16 = scalar_select %p30_p8, %s995_s19, %s32_s15  }
  0x16   : > { %p41_p12 = por %p40_p10, %p39_p9  ;;  %s346_s17 = sand.u32 1, %s995_s19  }
  0x17   : > { %s814_s24 = sshll.u32 %s346_s17, 4  ;;  %s828_s25 = sshll.u32 %s999_s20, 4 }
  0x18   : > { %s355_s3 = scalar_lea.hbm %s1378_s0, %s828_s25  ;;  %s350_s11 = scalar_lea.vmem [#allocation2], %s814_s24 }
  0x19   : > { %s358_s10 = sshll.u32 %s350_s11, 4  ;;  %s356_s8 = sshll.u32 %s355_s3, 4  ;;  %s359_s10 = int_to_ptr.vmem [resolvable:$true] %s358_s10  ;;  %s357_s8 = int_to_ptr.hbm [resolvable:$true] %s356_s8 }
  0x1a   : > { %p1130_p13 = pnand %p860_p11, %p41_p12  ;;  %s347_s29 = scalar_lea.sflag [#allocation3], %s346_s17 }
  0x1b   : > { %s931_s14 = sshra.s32 %s357_s8, 4  ;;  %s938_s3 = scalar_lea.hbm %s1378_s0, 32  ;;  %s932_s14 = int_to_ptr.hbm [resolvable:$true] %s931_s14 }
  0x1c   : > { %s933_s15 = scalar_lea.hbm %s932_s14, 16  ;;  %p935_p2 = pneg %p1130_p13 }
  0x1d   : > { %p934_p0 = scmp.ne.s32.totalorder %s932_s14, %s933_s15  ;;  %p939_p7 = scmp.lt.s32.totalorder %s932_s14, %s1378_s0 }
  0x1e   : > { %p940_p8 = scmp.lt.s32.totalorder %s938_s3, %s933_s15 }
  0x1f   : > { %p936_p3 = pnand %p935_p2, %p934_p0 }
  0x20   : > { %p941_p9 = por %p940_p8, %p939_p7 }
  0x21   : > { %p937_p6 = pneg %p936_p3 }
  0x23   : > { %p942_p10 = pnand %p941_p9, %p937_p6 }
  0x25   : > { %945 = shalt.err (!%p942_p10)
}
  0x26   : > { %858 = dma.hbm_to_vmem [thread:$0]  (!%p1130_p13), %s357_s8, 256, %s359_s10, %s347_s29, %s1002_s12, %s1002_s12, %s1003_s13  }
  0x27   : > { %370 = sbr.rel (%p1101_p5) target bundleno = 756 (0x2f4), region = 64  ;;  %s372_s17 = sand.u32 (!%p1101_p5), 1, %s991_s18  }
  0x28   : > { %s1150_s28 = sshll.u32 (!%p1101_p5), %s372_s17, 4  ;;  %s373_s14 = scalar_lea.sflag (!%p1101_p5), [#allocation3], %s372_s17 }
  0x29   : > { %s376_s15 = scalar_lea.vmem (!%p1101_p5), [#allocation2], %s1150_s28 }
  0x2c   : > { %978 = dma.done.wait (%p1094_p4), %s373_s14, 256  }
  0x2d   : > { %980 = vsyncadd (%p1094_p4), %s373_s14, 4294967040 }
  0x2e   : > { %982 = dma.done.wait (%p1086_p1), [#allocation5], 4096  }
  0x2f   : > { %984 = vsyncadd (%p1086_p1), [#allocation5], 4294963200  ;;  %v460_v0 = vld [vmem:[%s1379_s1 + $0xf0] sm:$0xff]  ;;  %v458_v1 = vld [vmem:[%s1379_s1 + $0xe0] sm:$0xff]  ;;  %vm659_vm0 = vcmask 523264   ;;  %s1400_s22 = sld [smem:[#allocation9_spill]] }
  0x30   : > { %v461_v2 = vld [vmem:[%s1379_s1 + $0xf8] sm:$0xff]  ;;  %468 = vmatpush.msra.mxu0 %v460_v0  ;;  %v459_v3 = vld [vmem:[%s1379_s1 + $0xe8] sm:$0xff]  ;;  %v456_v4 = vld [vmem:[%s1379_s1 + $0xd0] sm:$0xff]  ;;  %vm699_vm1 = vcmask 261120   ;;  %s1401_s21 = sadd.s32 4294967295, %s999_s20   ;;  %s1402_s17 = sld [smem:[#allocation10_spill]] }
  0x31   : > { %491 = vmatpush.msra.mxu1 %v461_v2  ;;  %v457_v5 = vld [vmem:[%s1379_s1 + $0xd8] sm:$0xff]  ;;  %v454_v6 = vld [vmem:[%s1379_s1 + $0xc0] sm:$0xff]  ;;  %v455_v7 = vld [vmem:[%s1379_s1 + $0xc8] sm:$0xff]  ;;  %s820_s24 = sshll.u32 %s1401_s21, 1  ;;  %vm729_vm2 = vcmask 64512  }
  0x32   : > { %469 = vmatpush.msra.mxu0 %v458_v1  ;;  %v452_v8 = vld [vmem:[%s1379_s1 + $0xb0] sm:$0xff]  ;;  %v453_v9 = vld [vmem:[%s1379_s1 + $0xb8] sm:$0xff]  ;;  %v450_v10 = vld [vmem:[%s1379_s1 + $0xa0] sm:$0xff]  ;;  %p423_p1 = scmp.lt.s32.totalorder %s820_s24, 3 }
  0x33   : > { %492 = vmatpush.msra.mxu1 %v459_v3  ;;  %v451_v11 = vld [vmem:[%s1379_s1 + $0xa8] sm:$0xff]  ;;  %v448_v12 = vld [vmem:[%s1379_s1 + $0x90] sm:$0xff]  ;;  %v449_v13 = vld [vmem:[%s1379_s1 + $0x98] sm:$0xff] }
  0x34   : > { %470 = vmatpush.msra.mxu0 %v456_v4  ;;  %v533_v14 = vld [vmem:[#allocation4 + $0x78] sm:$0xff]  ;;  %v532_v15 = vld [vmem:[#allocation4 + $0x70] sm:$0xff]  ;;  %v446_v16 = vld [vmem:[%s1379_s1 + $0x80] sm:$0xff]  ;;  %s1409_s24 = smov (!%p423_p1, %s820_s24), 3 }
  0x35   : > { %493 = vmatpush.msra.mxu1 %v457_v5  ;;  %v447_v17 = vld [vmem:[%s1379_s1 + $0x88] sm:$0xff]  ;;  %554 = vmatpush.msra.mxu2 %v533_v14  ;;  %v549_v18 = vld [vmem:[#allocation4 + $0xf8] sm:$0xff]  ;;  %v548_v20 = vld [vmem:[#allocation4 + $0xf0] sm:$0xff]  ;;  %s821_s3 = sshll.u32 %s1409_s24, 3 }
  0x36   : > { %471 = vmatpush.msra.mxu0 %v454_v6  ;;  %v531_v19 = vld [vmem:[#allocation4 + $0x68] sm:$0xff]  ;;  %v444_v21 = vld [vmem:[%s1379_s1 + $0x70] sm:$0xff]  ;;  %v445_v22 = vld [vmem:[%s1379_s1 + $0x78] sm:$0xff]  ;;  %577 = vmatpush.msra.mxu3 %v549_v18 }
  0x37   : > { %494 = vmatpush.msra.mxu1 %v455_v7  ;;  %555 = vmatpush.msra.mxu2 %v532_v15  ;;  %v530_v23 = vld [vmem:[#allocation4 + $0x60] sm:$0xff]  ;;  %v547_v24 = vld [vmem:[#allocation4 + $0xe8] sm:$0xff]  ;;  %v529_v27 = vld [vmem:[#allocation4 + $0x58] sm:$0xff] }
  0x38   : > { %472 = vmatpush.msra.mxu0 %v452_v8  ;;  %v442_v25 = vld [vmem:[%s1379_s1 + $0x60] sm:$0xff]  ;;  %v443_v26 = vld [vmem:[%s1379_s1 + $0x68] sm:$0xff]  ;;  %578 = vmatpush.msra.mxu3 %v548_v20  ;;  %v440_v29 = vld [vmem:[%s1379_s1 + $0x50] sm:$0xff] }
  0x39   : > { %495 = vmatpush.msra.mxu1 %v453_v9  ;;  %556 = vmatpush.msra.mxu2 %v531_v19  ;;  %v546_v28 = vld [vmem:[#allocation4 + $0xe0] sm:$0xff]  ;;  %v441_v31 = vld [vmem:[%s1379_s1 + $0x58] sm:$0xff]  ;;  %v439_v32 = vld [vmem:[%s1379_s1 + $0x48] sm:$0xff] }
  0x3a   : > { %473 = vmatpush.msra.mxu0 %v450_v10  ;;  %v438_v30 = vld [vmem:[%s1379_s1 + $0x40] sm:$0xff]  ;;  %579 = vmatpush.msra.mxu3 %v547_v24  ;;  %v528_v33 = vld [vmem:[#allocation4 + $0x50] sm:$0xff]  ;;  %v545_v34 = vld [vmem:[#allocation4 + $0xd8] sm:$0xff] }
  0x3b   : > { %496 = vmatpush.msra.mxu1 %v451_v11  ;;  %557 = vmatpush.msra.mxu2 %v530_v23  ;;  %v527_v35 = vld [vmem:[#allocation4 + $0x48] sm:$0xff]  ;;  %v544_v36 = vld [vmem:[#allocation4 + $0xd0] sm:$0xff]  ;;  %v437_v38 = vld [vmem:[%s1379_s1 + $0x38] sm:$0xff] }
  0x3c   : > { %474 = vmatpush.msra.mxu0 %v448_v12  ;;  %580 = vmatpush.msra.mxu3 %v546_v28  ;;  %v436_v37 = vld [vmem:[%s1379_s1 + $0x30] sm:$0xff]  ;;  %v526_v39 = vld [vmem:[#allocation4 + $0x40] sm:$0xff]  ;;  %v543_v40 = vld [vmem:[#allocation4 + $0xc8] sm:$0xff] }
  0x3d   : > { %497 = vmatpush.msra.mxu1 %v449_v13  ;;  %558 = vmatpush.msra.mxu2 %v529_v27  ;;  %v434_v41 = vld [vmem:[%s1379_s1 + $0x20] sm:$0xff]  ;;  %v435_v42 = vld [vmem:[%s1379_s1 + $0x28] sm:$0xff]  ;;  %v525_v43 = vld [vmem:[#allocation4 + $0x38] sm:$0xff] }
  0x3e   : > { %475 = vmatpush.msra.mxu0 %v446_v16  ;;  %581 = vmatpush.msra.mxu3 %v545_v34  ;;  %v542_v44 = vld [vmem:[#allocation4 + $0xc0] sm:$0xff]  ;;  %v432_v45 = vld [vmem:[%s1379_s1 + $0x10] sm:$0xff]  ;;  %v433_v46 = vld [vmem:[%s1379_s1 + $0x18] sm:$0xff] }
  0x3f   : > { %498 = vmatpush.msra.mxu1 %v447_v17  ;;  %559 = vmatpush.msra.mxu2 %v528_v33  ;;  %v524_v47 = vld [vmem:[#allocation4 + $0x30] sm:$0xff]  ;;  %v541_v48 = vld [vmem:[#allocation4 + $0xb8] sm:$0xff]  ;;  %v430_v49 = vld [vmem:[%s1379_s1] sm:$0xff] }
  0x40   : > { %476 = vmatpush.msra.mxu0 %v444_v21  ;;  %582 = vmatpush.msra.mxu3 %v544_v36  ;;  %v431_v50 = vld [vmem:[%s1379_s1 + $0x8] sm:$0xff]  ;;  %v428_v51 = vld [vmem:[%s376_s15] sm:$0xff]  ;;  %v521_v56 = vld [vmem:[#allocation4 + $0x18] sm:$0xff] }
  0x41   : > { %499 = vmatpush.msra.mxu1 %v445_v22  ;;  %560 = vmatpush.msra.mxu2 %v527_v35  ;;  %v523_v52 = vld [vmem:[#allocation4 + $0x28] sm:$0xff]  ;;  %v540_v53 = vld [vmem:[#allocation4 + $0xb0] sm:$0xff]  ;;  %v522_v54 = vld [vmem:[#allocation4 + $0x20] sm:$0xff] }
  0x42   : > { %477 = vmatpush.msra.mxu0 %v442_v25  ;;  %583 = vmatpush.msra.mxu3 %v543_v40  ;;  %v539_v55 = vld [vmem:[#allocation4 + $0xa8] sm:$0xff]  ;;  %v538_v57 = vld [vmem:[#allocation4 + $0xa0] sm:$0xff]  ;;  %v520_v59 = vld [vmem:[#allocation4 + $0x10] sm:$0xff] }
  0x43   : > { %500 = vmatpush.msra.mxu1 %v443_v26  ;;  %561 = vmatpush.msra.mxu2 %v526_v39  ;;  %v429_v58 = vld [vmem:[%s376_s15 + $0x8] sm:$0xff]  ;;  %v536_v62 = vld [vmem:[#allocation4 + $0x90] sm:$0xff]  ;;  %v518_v63 = vld [vmem:[#allocation4] sm:$0xff]  ;;  %s1403_s15 = sld [smem:[#allocation11_spill]] }
  0x44   : > { %478 = vmatpush.msra.mxu0 %v440_v29  ;;  %584 = vmatpush.msra.mxu3 %v542_v44  ;;  %v537_v60 = vld [vmem:[#allocation4 + $0x98] sm:$0xff]  ;;  %v519_v61 = vld [vmem:[#allocation4 + $0x8] sm:$0xff]  ;;  %v534_v1 = vld [vmem:[#allocation4 + $0x80] sm:$0xff] }
  0x45   : > { %501 = vmatpush.msra.mxu1 %v441_v31  ;;  %562 = vmatpush.msra.mxu2 %v525_v43  ;;  %v535_v0 = vld [vmem:[#allocation4 + $0x88] sm:$0xff]  ;;  %v617_v2 = vld [vmem:[%s1383_s5 + $0x78] sm:$0xff]  ;;  %v616_v3 = vld [vmem:[%s1383_s5 + $0x70] sm:$0xff] }
  0x46   : > { %479 = vmatpush.msra.mxu0 %v438_v30  ;;  %585 = vmatpush.msra.mxu3 %v541_v48  ;;  %v615_v4 = vld [vmem:[%s1383_s5 + $0x68] sm:$0xff]  ;;  %v614_v5 = vld [vmem:[%s1383_s5 + $0x60] sm:$0xff]  ;;  %v613_v6 = vld [vmem:[%s1383_s5 + $0x58] sm:$0xff] }
  0x47   : > { %502 = vmatpush.msra.mxu1 %v439_v32  ;;  %563 = vmatpush.msra.mxu2 %v524_v47  ;;  %v612_v7 = vld [vmem:[%s1383_s5 + $0x50] sm:$0xff]  ;;  %v611_v8 = vld [vmem:[%s1383_s5 + $0x48] sm:$0xff]  ;;  %v610_v9 = vld [vmem:[%s1383_s5 + $0x40] sm:$0xff] }
  0x48   : > { %480 = vmatpush.msra.mxu0 %v436_v37  ;;  %586 = vmatpush.msra.mxu3 %v540_v53  ;;  %v462_v10 = vld [vmem:[%s1380_s2] sm:$0x3]  ;;  %v609_v11 = vld [vmem:[%s1383_s5 + $0x38] sm:$0xff]  ;;  %v608_v14 = vld [vmem:[%s1383_s5 + $0x30] sm:$0xff] }
  0x49   : > { %503 = vmatpush.msra.mxu1 %v437_v38  ;;  %564 = vmatpush.msra.mxu2 %v523_v52  ;;  %v464_v12 = vperm.slane %v462_v10, 0  ;;  %v465_v13 = vperm.slane %v462_v10, 1  ;;  %v607_v15 = vld [vmem:[%s1383_s5 + $0x28] sm:$0xff]  ;;  %v606_v20 = vld [vmem:[%s1383_s5 + $0x20] sm:$0xff]  ;;  %v605_v29 = vld [vmem:[%s1383_s5 + $0x18] sm:$0xff]  ;;  %s426_s8 = scalar_lea.vmem %s1403_s15, %s821_s3 }
  0x4a   : > { %481 = vmatpush.msra.mxu0 %v434_v41  ;;  %587 = vmatpush.msra.mxu3 %v539_v55  ;;  %v604_v30 = vld [vmem:[%s1383_s5 + $0x10] sm:$0xff]  ;;  %v603_v31 = vld [vmem:[%s1383_s5 + $0x8] sm:$0xff]  ;;  %v602_v32 = vld [vmem:[%s1383_s5] sm:$0xff] }
  0x4b   : > { %504 = vmatpush.msra.mxu1 %v435_v42  ;;  %565 = vmatpush.msra.mxu2 %v522_v54  ;;  %v654_v33 = vld [vmem:[%s1385_s7 + $0x38] sm:$0xff]  ;;  %v653_v34 = vld [vmem:[%s1385_s7 + $0x30] sm:$0xff]  ;;  %v652_v35 = vld [vmem:[%s1385_s7 + $0x28] sm:$0xff] }
  0x4c   : > { %482 = vmatpush.msra.mxu0 %v432_v45  ;;  %588 = vmatpush.msra.mxu3 %v538_v57  ;;  %v651_v36 = vld [vmem:[%s1385_s7 + $0x20] sm:$0xff]  ;;  %v650_v37 = vld [vmem:[%s1385_s7 + $0x18] sm:$0xff]  ;;  %v693_v53 = vld [vmem:[%s1387_s9 + $0x10] sm:$0xff] }
  0x4d   : > { %505 = vmatpush.msra.mxu1 %v433_v46  ;;  %566 = vmatpush.msra.mxu2 %v521_v56  ;;  %v897_v38 = vld [vmem:[%s1382_s4] ss:$0 sm:$0xff]  ;;  %v694_v52 = vld [vmem:[%s1387_s9 + $0x18] sm:$0xff] }
  0x4e   : > { %483 = vmatpush.msra.mxu0 %v430_v49  ;;  %589 = vmatpush.msra.mxu3 %v537_v60  ;;  %v649_v49 = vld [vmem:[%s1385_s7 + $0x10] sm:$0xff]  ;;  %v898_v54 = vld [vmem:[%s1384_s6] ss:$0 sm:$0xff] }
  0x4f   : > { %506 = vmatpush.msra.mxu1 %v431_v50  ;;  %484 = vmatmul.f32.vlgmr.msra.gmra.mxu0 %v428_v51  ;;  %v648_v50 = vld [vmem:[%s1385_s7 + $0x8] sm:$0xff] }
  0x50   : > { %507 = vmatmul.f32.vlgmr.msra.gmra.mxu1 %v428_v51  ;;  %567 = vmatpush.msra.mxu2 %v520_v59  ;;  %v647_v51 = vld [vmem:[%s1385_s7] sm:$0xff] }
  0x51   : > { %590 = vmatpush.msra.mxu3 %v536_v62  ;;  %622 = vmatpush.msrb.mxu0 %v617_v2  ;;  %v691_v62 = vld [vmem:[%s1387_s9] sm:$0xff] }
  0x52   : > { %568 = vmatpush.msra.mxu2 %v519_v61  ;;  %674 = vmatpush.msrb.mxu1 %v654_v33  ;;  %v692_v61 = vld [vmem:[%s1387_s9 + $0x8] sm:$0xff] }
  0x53   : > { %591 = vmatpush.msra.mxu3 %v535_v0  ;;  %623 = vmatpush.msrb.mxu0 %v616_v3 }
  0x54   : > { %569 = vmatpush.msra.mxu2 %v518_v63  ;;  %675 = vmatpush.msrb.mxu1 %v653_v34  ;;  %v899_v63 = vld [vmem:[%s1400_s22] ss:$0 sm:$0xff] }
  0x55   : > { %592 = vmatpush.msra.mxu3 %v534_v1  ;;  %624 = vmatpush.msrb.mxu0 %v615_v4 }
  0x56   : > { %676 = vmatpush.msrb.mxu1 %v652_v35  ;;  %718 = vmatpush.msrb.mxu2 %v694_v52 }
  0x57   : > { %487 = vmatmul.f32.gmra.mxu0 %v429_v58  ;;  %829 = vmatpush.msrb.mxu3 %v617_v2 }
  0x58   : > { %510 = vmatmul.f32.gmra.mxu1 %v429_v58  ;;  %625 = vmatpush.msrb.mxu0 %v614_v5 }
  0x59   : > { %830 = vmatpush.msrb.mxu3 %v616_v3  ;;  %677 = vmatpush.msrb.mxu1 %v651_v36 }
  0x5a   : > { %626 = vmatpush.msrb.mxu0 %v613_v6  ;;  %719 = vmatpush.msrb.mxu2 %v693_v53 }
  0x5b   : > { %831 = vmatpush.msrb.mxu3 %v615_v4  ;;  %678 = vmatpush.msrb.mxu1 %v650_v37 }
  0x5c   : > { %627 = vmatpush.msrb.mxu0 %v612_v7  ;;  %720 = vmatpush.msrb.mxu2 %v692_v61 }
  0x5d   : > { %832 = vmatpush.msrb.mxu3 %v614_v5  ;;  %679 = vmatpush.msrb.mxu1 %v649_v49 }
  0x5e   : > { %628 = vmatpush.msrb.mxu0 %v611_v8  ;;  %721 = vmatpush.msrb.mxu2 %v691_v62 }
  0x5f   : > { %833 = vmatpush.msrb.mxu3 %v613_v6  ;;  %680 = vmatpush.msrb.mxu1 %v648_v50  ;;  %v900_v6 = vld [vmem:[%s1402_s17] ss:$0 sm:$0xff] }
  0x60   : > { %629 = vmatpush.msrb.mxu0 %v610_v9 }
  0x61   : > { %834 = vmatpush.msrb.mxu3 %v612_v7  ;;  %681 = vmatpush.msrb.mxu1 %v647_v51 }
  0x62   : > { %630 = vmatpush.msrb.mxu0 %v609_v11 }
  0x63   : > { %835 = vmatpush.msrb.mxu3 %v611_v8 }
  0x64   : > { %631 = vmatpush.msrb.mxu0 %v608_v14 }
  0x65   : > { %836 = vmatpush.msrb.mxu3 %v610_v9 }
  0x66   : > { %632 = vmatpush.msrb.mxu0 %v607_v15 }
  0x67   : > { %837 = vmatpush.msrb.mxu3 %v609_v11 }
  0x68   : > { %633 = vmatpush.msrb.mxu0 %v606_v20 }
  0x69   : > { %838 = vmatpush.msrb.mxu3 %v608_v14 }
  0x6a   : > { %634 = vmatpush.msrb.mxu0 %v605_v29 }
  0x6b   : > { %839 = vmatpush.msrb.mxu3 %v607_v15 }
  0x6c   : > { %635 = vmatpush.msrb.mxu0 %v604_v30 }
  0x6d   : > { %840 = vmatpush.msrb.mxu3 %v606_v20 }
  0x6e   : > { %636 = vmatpush.msrb.mxu0 %v603_v31 }
  0x6f   : > { %841 = vmatpush.msrb.mxu3 %v605_v29 }
  0x70   : > { %637 = vmatpush.msrb.mxu0 %v602_v32 }
  0x71   : > { %842 = vmatpush.msrb.mxu3 %v604_v30 }
  0x73   : > { %843 = vmatpush.msrb.mxu3 %v603_v31 }
  0x75   : > { %844 = vmatpush.msrb.mxu3 %v602_v32 }
  0xcc   : > { %v485_v16 = vpop.f32.mrf.mxu0 }
  0xcd   : > { %v508_v17 = vpop.f32.mrf.mxu1  ;;  %v486_v18 = vadd.f32 %v485_v16, %v464_v12 }
  0xce   : > { %v509_v19 = vadd.f32 %v508_v17, %v465_v13 }
  0xcf   : > { %v514_v21 = vmax.f32 %v486_v18, 0.0 }
  0xd0   : > { %v515_v22 = vmax.f32 %v509_v19, 0.0 }
  0xd1   : > { %570 = vmatmul.f32.vlgmr.msra.gmra.mxu2 %v514_v21 }
  0xd2   : > { %593 = vmatmul.f32.vlgmr.msra.gmra.mxu3 %v515_v22 }
  0xd4   : > { %v488_v23 = vpop.f32.mrf.mxu0 }
  0xd5   : > { %v511_v24 = vpop.f32.mrf.mxu1  ;;  %v489_v25 = vadd.f32 %v488_v23, %v464_v12 }
  0xd6   : > { %v512_v26 = vadd.f32 %v511_v24, %v465_v13 }
  0xd7   : > { %v516_v27 = vmax.f32 %v489_v25, 0.0 }
  0xd8   : > { %v517_v28 = vmax.f32 %v512_v26, 0.0 }
  0xd9   : > { %573 = vmatmul.f32.gmra.mxu2 %v516_v27 }
  0xda   : > { %596 = vmatmul.f32.gmra.mxu3 %v517_v28 }
 0x154   : > { %v571_v39 = vpop.f32.mrf.mxu2 }
 0x155   : > { %v594_v40 = vpop.f32.mrf.mxu3  ;;  %v572_v41 = vadd.f32 %v897_v38, %v571_v39 }
 0x157   : > { %v595_v42 = vadd.f32 %v594_v40, %v572_v41 }
 0x159   : > { %v600_v43 = vmax.f32 %v595_v42, 0.0 }
 0x15b   : > { %638 = vmatmul.f32.vlgmr.msrb.gmra.mxu0 %v600_v43 }
 0x15c   : > { %v574_v44 = vpop.f32.mrf.mxu2 }
 0x15d   : > { %v597_v45 = vpop.f32.mrf.mxu3  ;;  %v575_v46 = vadd.f32 %v897_v38, %v574_v44 }
 0x15f   : > { %v598_v47 = vadd.f32 %v597_v45, %v575_v46 }
 0x161   : > { %v601_v48 = vmax.f32 %v598_v47, 0.0 }
 0x163   : > { %641 = vmatmul.f32.vlgmr.msrb.gmra.mxu3 %v601_v48 }
 0x1d8   : > { %v639_v55 = vpop.f32.mrf.mxu0 }
 0x1d9   : > { %v640_v56 = vadd.f32 %v898_v54, %v639_v55 }
 0x1db   : > { %v645_v57 = vmax.f32 %v640_v56, 0.0 }
 0x1dd   : > { %822 = vmatmul.msk.f32.vlgmr.msrb.gmra.mxu1 %vm659_vm0, %v645_v57 }
 0x1e6   : > { %v642_v58 = vpop.f32.mrf.mxu3 }
 0x1e7   : > { %v643_v59 = vadd.f32 %v898_v54, %v642_v58 }
 0x1e9   : > { %v646_v60 = vmax.f32 %v643_v59, 0.0 }
 0x1eb   : > { %823 = vmatmul.msk.f32.gmra.mxu1 %vm659_vm0, %v646_v60 }
 0x25a   : > { %v683_v0 = vpop.f32.mrf.mxu1 }
 0x25b   : > { %v684_v1 = vadd.f32 %v899_v63, %v683_v0 }
 0x25d   : > { %v689_v2 = vmax.f32 %v684_v1, 0.0 }
 0x25f   : > { %824 = vmatmul.msk.f32.vlgmr.msrb.gmra.mxu2 %vm699_vm1, %v689_v2 }
 0x268   : > { %v686_v3 = vpop.f32.mrf.mxu1 }
 0x269   : > { %v687_v4 = vadd.f32 %v899_v63, %v686_v3 }
 0x26b   : > { %v690_v5 = vmax.f32 %v687_v4, 0.0 }
 0x26d   : > { %825 = vmatmul.msk.f32.gmra.mxu2 %vm699_vm1, %v690_v5 }
 0x2e2   : > { %v723_v7 = vpop.f32.mrf.mxu2 }
 0x2e3   : > { %v724_v8 = vadd.f32 %v900_v6, %v723_v7 }
 0x2e5   : > { %730 = vst.msk [vmem:[%s426_s8] sm:$0xff] %vm729_vm2, %v724_v8 }
 0x2f0   : > { %v726_v9 = vpop.f32.mrf.mxu2 }
 0x2f1   : > { %v727_v10 = vadd.f32 %v900_v6, %v726_v9 }
 0x2f3   : > { %731 = vst.msk [vmem:[%s426_s8 + $0x8] sm:$0xff] %vm729_vm2, %v727_v10 }
 0x2f4 PF: > { %p22_p4 = scmp.ge.s32.totalorder %s1110_s30, 4   ;;  %s1404_s17 = smov %s991_s18 }
 0x2f5   : > { %s1405_s18 = smov %s995_s19  ;;  %s1406_s19 = smov %s1123_s16 }
 0x2f6   : > { %s1407_s20 = smov %s1110_s30  ;;  %24 = sbr.rel (!%p22_p4) target bundleno = 9 (0x9), region = 108 }
 0x2fb   :  { %754 = vsyncpa [#allocation3], 1 }
 0x2fc   :  { %756 = vsyncpa [#allocation3 + $0x1], 1 }
 0x2fd   :  { %757 = vsyncpa [#allocation5], 1 }

</bundles_post_ra>
